<compile_context>
chip_gen: v5e
topology: v5e:2x2
jax: 0.10.0
libtpu: 0.0.40
codegen_flags: <defaults>
</compile_context>

<pallas_src>
import functools

import jax
import jax.numpy as jnp
from jax.experimental import pallas as pl
from jax.experimental.pallas import tpu as pltpu


def _round_up(x, m):
    return ((x + m - 1) // m) * m


def _linear_kernel(x_ref, w_ref, b_ref, o_ref):
    # y = x @ W + b, accumulate in f32 on the MXU, bias added in f32.
    acc = jnp.dot(x_ref[...], w_ref[...], preferred_element_type=jnp.float32)
    o_ref[...] = (acc + b_ref[...]).astype(o_ref.dtype)


@functools.partial(jax.jit, static_argnames=())
def _linear_pallas(x2d, w, b):
    """x2d: (M, F), w: (F, N), b: (1, N) -> (M, N)."""
    M, F = x2d.shape
    N = w.shape[1]

    # --- lane-dense output: pad N up to a multiple of 128 (zero columns). ---
    N_pad = _round_up(N, 128)
    if N_pad != N:
        w = jnp.pad(w, ((0, 0), (0, N_pad - N)))
        b = jnp.pad(b, ((0, 0), (0, N_pad - N)))

    # --- row tiling: large TM (multiple of 8), pad M so tiles are exact. ---
    TM = 512 if M >= 512 else _round_up(max(M, 1), 8)
    M_pad = _round_up(M, TM)
    if M_pad != M:
        x2d = jnp.pad(x2d, ((0, M_pad - M), (0, 0)))  # zero rows -> discarded

    grid = (M_pad // TM,)

    # VMEM budget: double-buffered x/out tiles + (conservatively 2x) W and b.
    dt = x2d.dtype.itemsize
    vmem_needed = (
        2 * (TM * F + TM * N_pad) * dt        # streamed x / out blocks
        + 2 * (F * N_pad + N_pad) * dt        # resident W, b (count 2x, safe)
    )
    vmem_limit = min(max(vmem_needed + (4 << 20), 8 << 20), 48 << 20)

    cost = pl.CostEstimate(
        flops=2 * M_pad * F * N_pad,
        transcendentals=0,
        bytes_accessed=dt * (M_pad * F + F * N_pad + M_pad * N_pad),
    )

    out = pl.pallas_call(
        _linear_kernel,
        out_shape=jax.ShapeDtypeStruct((M_pad, N_pad), x2d.dtype),
        grid_spec=pl.GridSpec(
            grid=grid,
            in_specs=[
                # x rows stream through the pipeline; F == full last dim.
                pl.BlockSpec((TM, F), lambda i: (i, 0)),
                # W and b: constant block index -> stay resident in VMEM.
                pl.BlockSpec((F, N_pad), lambda i: (0, 0)),
                pl.BlockSpec((1, N_pad), lambda i: (0, 0)),
            ],
            out_specs=pl.BlockSpec((TM, N_pad), lambda i: (i, 0)),
        ),
        compiler_params=pltpu.CompilerParams(
            # Pure row-parallel matmul (no reduction axis) -> safe to shard
            # across v7x's two TensorCores; free on v5e/v6e.
            dimension_semantics=("parallel",),
            vmem_limit_bytes=vmem_limit,
        ),
        cost_estimate=cost,
    )(x2d, w, b)

    # Strip row / lane padding.
    return out[:M, :N]


def time_distributed_linear(x, w, b, batch_first=False):
    """Mirrors TimeDistributed_wrapper.forward with module = Linear(F, N)."""
    if x.ndim <= 2:
        x2d = x if x.ndim == 2 else x.reshape(1, -1)
        y = _linear_pallas(x2d, w, b)
        return y if x.ndim == 2 else y.reshape(-1)

    F = x.shape[-1]
    x_reshape = x.reshape(-1, F)                     # contiguous().view(-1, F)
    y = _linear_pallas(x_reshape, w, b)              # (T*B, N)
    N = y.shape[-1]
    if batch_first:
        return y.reshape(x.shape[0], -1, N)          # (B, T, N)
    else:
        return y.reshape(-1, x.shape[1], N)          # (T, B, N)


if __name__ == "__main__":
    key = jax.random.PRNGKey(0)
    k_x, k_w, k_b = jax.random.split(key, 3)

    # Shapes implied by the forward: x = (seq, batch, hidden), wrapped Linear.
    T, B, F, N = 8, 2, 32, 32
    x = jax.random.normal(k_x, (T, B, F), dtype=jnp.float32)
    # Deterministic synthetic Linear params (weight stored as (F, N) = W^T).
    w = (jax.random.normal(k_w, (F, N), dtype=jnp.float32) / jnp.sqrt(F))
    b = jax.random.normal(k_b, (1, N), dtype=jnp.float32) * 0.1

    y = time_distributed_linear(x, w, b, batch_first=False)
    jax.block_until_ready(y)
    assert y.shape == (T, B, N), y.shape

    # Reference check against plain JAX (same semantics as the PyTorch module).
    y_ref = (x.reshape(-1, F) @ w + b).reshape(-1, B, N)
    assert jnp.allclose(y, y_ref, atol=1e-5, rtol=1e-5)

    # Also exercise the ndim<=2 path.
    y2 = time_distributed_linear(x[0], w, b)
    assert jnp.allclose(y2, x[0] @ w + b, atol=1e-5, rtol=1e-5)

    print("KERNEL_OK")
</pallas_src>

<mosaic_0001>
module attributes {stable_mosaic.version = 11 : i64} {
  func.func @_linear_kernel(%arg0: i32, %arg1: memref<16x32xf32, #tpu.memory_space<vmem>>, %arg2: memref<32x128xf32, #tpu.memory_space<vmem>>, %arg3: memref<1x128xf32, #tpu.memory_space<vmem>>, %arg4: memref<16x128xf32, #tpu.memory_space<vmem>>) attributes {dimension_semantics = [#tpu.dimension_semantics<parallel>], iteration_bounds = array<i64: 1>, scalar_prefetch = 0 : i64, scratch_operands = 0 : i64, tpu.core_type = #tpu.core_type<tc>, window_params = [{transform_indices = @transform_0, window_bounds = array<i64: 16, 32>}, {pipeline_mode = #tpu.pipeline_mode<synchronous>, transform_indices = @transform_1, window_bounds = array<i64: 32, 128>}, {pipeline_mode = #tpu.pipeline_mode<synchronous>, transform_indices = @transform_2, window_bounds = array<i64: 1, 128>}, {transform_indices = @transform_3, window_bounds = array<i64: 16, 128>}]} {
    %c0 = arith.constant 0 : index
    %c0_0 = arith.constant 0 : index
    %0 = vector.load %arg1[%c0, %c0_0] : memref<16x32xf32, #tpu.memory_space<vmem>>, vector<16x32xf32>
    %c0_1 = arith.constant 0 : index
    %c0_2 = arith.constant 0 : index
    %1 = vector.load %arg2[%c0_1, %c0_2] : memref<32x128xf32, #tpu.memory_space<vmem>>, vector<32x128xf32>
    %cst = arith.constant dense<0.000000e+00> : vector<16x128xf32>
    %2 = tpu.matmul %0, %1, %cst {dimension_numbers = #tpu.dot_dimension_numbers<[1], [0], [0], [1], [0, 0, 1, 1], [], []>} : vector<16x32xf32>, vector<32x128xf32>, vector<16x128xf32> -> vector<16x128xf32>
    %c0_3 = arith.constant 0 : index
    %c0_4 = arith.constant 0 : index
    %3 = vector.load %arg3[%c0_3, %c0_4] : memref<1x128xf32, #tpu.memory_space<vmem>>, vector<1x128xf32>
    %4 = vector.broadcast %3 : vector<1x128xf32> to vector<16x128xf32>
    %5 = arith.addf %2, %4 : vector<16x128xf32>
    %c0_5 = arith.constant 0 : index
    %c0_6 = arith.constant 0 : index
    %6 = vector.load %arg4[%c0_5, %c0_6] : memref<16x128xf32, #tpu.memory_space<vmem>>, vector<16x128xf32>
    tpu.vector_store %arg4[%c0_5, %c0_6], %5 {strides = array<i32>} : memref<16x128xf32, #tpu.memory_space<vmem>>, vector<16x128xf32>,
    return
  }
  func.func @transform_0(%arg0: i32) -> (i32, i32) {
    %c0_i32 = arith.constant 0 : i32
    %c0_i32_0 = arith.constant 0 : i32
    return %arg0, %c0_i32 : i32, i32
  }
  func.func @transform_1(%arg0: i32) -> (i32, i32) {
    %c0_i32 = arith.constant 0 : i32
    %c0_i32_0 = arith.constant 0 : i32
    %c0_i32_1 = arith.constant 0 : i32
    return %c0_i32, %c0_i32_0 : i32, i32
  }
  func.func @transform_2(%arg0: i32) -> (i32, i32) {
    %c0_i32 = arith.constant 0 : i32
    %c0_i32_0 = arith.constant 0 : i32
    %c0_i32_1 = arith.constant 0 : i32
    return %c0_i32, %c0_i32_0 : i32, i32
  }
  func.func @transform_3(%arg0: i32) -> (i32, i32) {
    %c0_i32 = arith.constant 0 : i32
    %c0_i32_0 = arith.constant 0 : i32
    return %arg0, %c0_i32 : i32, i32
  }
}

</mosaic_0001>

<bundles_post_ra>
// kernel: _linear_pallas.1
= control target key start
LH: loop header
LB: loop body
LE: loop exit
PB: predicated region body
PF: predicated region fallthrough
CT: control target
= control target key end

     0   :  { %s158_s0 = inlined_call_operand.vmem [shape: f32[16,32], index: 0, kind: input, shape index: {}]   ;;  %s159_s1 = inlined_call_operand.vmem [shape: f32[32,128], index: 1, kind: input, shape index: {}]   ;;  %s160_s2 = inlined_call_operand.vmem [shape: f32[1,128], index: 2, kind: input, shape index: {}]   ;;  %s161_s3 = inlined_call_operand.hbm [shape: f32[16,128], index: 3, kind: output, shape index: {}]  }
   0x1   :  { %v20_v0 = vld [vmem:[%s159_s1 + $0x18] sm:$0xff]  ;;  %v19_v1 = vld [vmem:[%s159_s1 + $0x10] sm:$0xff]  ;;  %v18_v2 = vld [vmem:[%s159_s1 + $0x8] sm:$0xff] }
   0x2   :  { %44 = vmatpush.msra.mxu0 %v20_v0  ;;  %77 = vmatpush.msra.mxu1 %v20_v0 }
   0x3   :  { %8 = vsyncpa [#allocation3], 0  ;;  %v17_v3 = vld [vmem:[%s159_s1] sm:$0xff]  ;;  %vm25_vm0 = vcmask 261120   ;;  %v16_v5 = vld [vmem:[%s158_s0 + $0x8] sm:$0xff]  ;;  %s111_s1 = smov [#allocation2]  }
   0x4   :  { %45 = vmatpush.msra.mxu0 %v19_v1  ;;  %78 = vmatpush.msra.mxu1 %v19_v1  ;;  %v15_v4 = vld [vmem:[%s158_s0] sm:$0xff]  ;;  %s61_s26 = sshll.u32 %s111_s1, 4  ;;  %s63_s29 = sshll.u32 %s161_s3, 4  ;;  %s62_s26 = int_to_ptr.vmem [resolvable:$true] %s61_s26  ;;  %s64_s29 = int_to_ptr.hbm [resolvable:$true] %s63_s29 }
   0x5   :  { %v84_v6 = vld [vmem:[%s160_s2] ss:$0 sm:$0xff]  ;;  %s112_s0 = smov 128   ;;  %s113_s30 = smov 8  }
   0x6   :  { %46 = vmatpush.msra.mxu0 %v18_v2  ;;  %79 = vmatpush.msra.mxu1 %v18_v2 }
   0x8   :  { %47 = vmatpush.msra.mxu0 %v17_v3  ;;  %80 = vmatpush.msra.mxu1 %v17_v3 }
   0x9   :  { %75 = vmatmul.msk.f32.vlgmr.msra.gmra.mxu0 %vm25_vm0, %v15_v4  ;;  %76 = vmatmul.msk.f32.vlgmr.msra.gmra.mxu1 %vm25_vm0, %v16_v5 }
  0x86   :  { %v49_v7 = vpop.f32.mrf.mxu0  ;;  %v52_v8 = vpop.f32.mrf.mxu1 }
  0x87   :  { %v50_v9 = vadd.f32 %v84_v6, %v49_v7  ;;  %v53_v10 = vadd.f32 %v84_v6, %v52_v8 }
  0x89   :  { %55 = vst [vmem:[#allocation2] sm:$0xff] %v50_v9 }
  0x8a   :  { %56 = vst [vmem:[#allocation2 + $0x8] sm:$0xff] %v53_v10 }
  0x8b   :  { %69 = dma.vmem_to_hbm [thread:$0]  %s62_s26, 256, %s64_s29, [#allocation3], %s112_s0, %s112_s0, %s113_s30  }
  0x8c   :  { %109 = dma.done.wait [#allocation3], 256  }
  0x8d   :  { %110 = vsyncadd [#allocation3], 4294967040 }
  0x8e   :  { %74 = vsyncpa [#allocation3], 1 }

</bundles_post_ra>
